<compile_context>
chip_gen: v7x
topology: tpu7x:2x2x1
jax: 0.10.0
libtpu: 0.0.40
codegen_flags: <defaults>
</compile_context>

<pallas_src>
import functools
from math import sqrt

import numpy as np
import jax
import jax.numpy as jnp
from jax import lax
from jax.experimental import pallas as pl
from jax.experimental.pallas import tpu as pltpu


# ----------------------------- Pallas kernel ------------------------------ #

def _encoder_kernel(ids_ref, emb_ref, pos_ref, out_ref, *,
                    scale, tile_rows, s_pad):
    """One grid step: produce a (tile_rows, D) slab of the output.

    ids_ref : (B*S_pad,)      int32  SMEM  (scalar-prefetched flattened ids)
    emb_ref : (V, D)          f32    VMEM  (whole embedding table, resident)
    pos_ref : (S_pad, D)      f32    VMEM  (positional slab, resident)
    out_ref : (tile_rows, D)  f32    VMEM  (output tile; batch dim squeezed)
    """
    b = pl.program_id(0)
    j = pl.program_id(1)
    row0 = b * s_pad + j * tile_rows            # base into flattened ids
    pos0 = pl.multiple_of(j * tile_rows, 8)     # base into positional slab

    # Row gather from the VMEM-resident table: per-row dynamic loads written
    # straight into the output tile (no HBM DMA, no landing buffer).
    def gather_row(r, carry):
        tok = ids_ref[row0 + r]
        out_ref[pl.ds(r, 1), :] = emb_ref[pl.ds(tok, 1), :]
        return carry

    lax.fori_loop(0, tile_rows, gather_row, 0, unroll=8)

    # Fused scale + positional add, vectorized over the whole tile.  The VPU
    # multiply/add is free filler under the load/store slots in this
    # memory-bound regime (do NOT pre-scale the table in the wrapper).
    out_ref[...] = (out_ref[...] * jnp.float32(scale)
                    + pos_ref[pl.ds(pos0, tile_rows), :])
    # TODO(synk): dropout omitted (identity at inference / eval mode).


# ------------------------------ host wrapper ------------------------------- #

def music_transformer_encoder(ids, emb_table, pos_enc, *, d_model):
    """ids: (B, S) int; emb_table: (V, D) f32; pos_enc: (max_pos, D) f32."""
    B, S = ids.shape
    V, D = emb_table.shape

    # Row tile over the sequence axis: as large as possible (amortizes the
    # per-grid-step overhead), multiple of 8 for sublane alignment.
    tile_rows = min(512, ((S + 7) // 8) * 8)
    S_pad = pl.cdiv(S, tile_rows) * tile_rows
    tiles_per_seq = S_pad // tile_rows

    # Glue: clamp ids (an OOB id would make the dynamic row load read garbage),
    # pad the sequence to the tile boundary, flatten for SMEM scalar prefetch.
    ids_i32 = jnp.clip(ids.astype(jnp.int32), 0, V - 1)
    if S_pad != S:
        ids_i32 = jnp.pad(ids_i32, ((0, 0), (0, S_pad - S)))
    ids_flat = ids_i32.reshape(B * S_pad)

    # Positional slab covering exactly S_pad rows.  Zero rows beyond the table
    # (also covers max_abs_position == 0 -> pure "no positional term" path).
    P = pos_enc.shape[0]
    if P >= S_pad:
        pos = pos_enc[:S_pad]
    else:
        pos = jnp.pad(pos_enc, ((0, S_pad - P), (0, 0)))

    kernel = functools.partial(
        _encoder_kernel, scale=float(sqrt(d_model)),
        tile_rows=tile_rows, s_pad=S_pad)

    # VMEM budget: resident emb + pos (double-buffered by the pipeline) plus a
    # couple of output tiles; leave headroom.  For very large vocabularies that
    # do not fit VMEM one would fall back to a double-buffered HBM gather.
    vmem_needed = 4 * (2 * V * D + 2 * S_pad * D + 4 * tile_rows * D)
    vmem_limit = int(min(max(2 * vmem_needed, 32 << 20), 100 << 20))

    # TODO(synk): for d_model < 128 a lane-dense output view ((rows/k, 128))
    # would avoid masked partial stores; production d_model (256/512) is
    # already lane-dense so the plain layout is kept here.
    out = pl.pallas_call(
        kernel,
        out_shape=jax.ShapeDtypeStruct((B, S_pad, D), jnp.float32),
        grid_spec=pltpu.PrefetchScalarGridSpec(
            num_scalar_prefetch=1,                                   # ids -> SMEM
            grid=(B, tiles_per_seq),
            in_specs=[
                pl.BlockSpec((V, D), lambda b, j, ids: (0, 0)),      # emb, resident
                pl.BlockSpec((S_pad, D), lambda b, j, ids: (0, 0)),  # pos, resident
            ],
            out_specs=pl.BlockSpec((None, tile_rows, D),
                                   lambda b, j, ids: (b, j, 0)),
        ),
        compiler_params=pltpu.CompilerParams(
            dimension_semantics=("parallel", "parallel"),  # shards across TCs (v7x)
            vmem_limit_bytes=vmem_limit,
        ),
    )(ids_flat, emb_table, pos)

    if S_pad != S:
        out = out[:, :S, :]
    return out


# --------------------------- parameter builders ---------------------------- #

def abs_positional_encoding(max_position, d_model):
    """Sinusoidal absolute positional encoding -> (max_position, d_model)."""
    if max_position <= 0:
        return jnp.zeros((0, d_model), dtype=jnp.float32)
    pos = np.arange(max_position, dtype=np.float32)[:, None]                   # (P, 1)
    i = np.arange(d_model, dtype=np.float32)[None, :]                          # (1, D)
    angle_rates = 1.0 / np.power(10000.0, (2.0 * np.floor(i / 2.0)) / d_model)
    angles = pos * angle_rates                                                 # (P, D)
    pe = np.zeros((max_position, d_model), dtype=np.float32)
    pe[:, 0::2] = np.sin(angles[:, 0::2])
    pe[:, 1::2] = np.cos(angles[:, 1::2])
    return jnp.asarray(pe)


# --------------------------------- main ------------------------------------ #

if __name__ == "__main__":
    # Small, self-consistent hyperparameters.
    d_model = 32
    vocab_size = 64
    max_abs_position = 16
    batch = 2
    seq_len = 8

    key = jax.random.PRNGKey(0)
    k_emb, k_ids = jax.random.split(key)

    # Deterministic parameter init (nn.Embedding default ~ N(0, 1)).
    emb_table = jax.random.normal(k_emb, (vocab_size, d_model), dtype=jnp.float32)
    pos_enc = abs_positional_encoding(max_abs_position, d_model)

    # Deterministic example input: batch of token-id sequences.
    ids = jax.random.randint(k_ids, (batch, seq_len), 0, vocab_size, dtype=jnp.int32)

    out = music_transformer_encoder(ids, emb_table, pos_enc, d_model=d_model)
    out = jax.block_until_ready(out)

    # Pure-JAX/NumPy reference check of the forward-pass semantics.
    ref = (np.asarray(emb_table)[np.asarray(ids)] * np.float32(sqrt(d_model))
           + np.asarray(pos_enc)[:seq_len][None, :, :])
    assert out.shape == (batch, seq_len, d_model)
    np.testing.assert_allclose(np.asarray(out), np.asarray(ref), rtol=1e-5, atol=1e-5)

    print("KERNEL_OK")
</pallas_src>

<mosaic_0001>
module attributes {stable_mosaic.version = 11 : i64} {
  func.func @_encoder_kernel(%arg0: i32, %arg1: i32, %arg2: memref<16xi32, #tpu.memory_space<smem>>, %arg3: memref<64x32xf32, #tpu.memory_space<vmem>>, %arg4: memref<8x32xf32, #tpu.memory_space<vmem>>, %arg5: memref<1x8x32xf32, #tpu.memory_space<vmem>>) attributes {dimension_semantics = [#tpu.dimension_semantics<parallel>, #tpu.dimension_semantics<parallel>], iteration_bounds = array<i64: 2, 1>, scalar_prefetch = 1 : i64, scratch_operands = 0 : i64, tpu.core_type = #tpu.core_type<tc>, window_params = [{pipeline_mode = #tpu.pipeline_mode<synchronous>, transform_indices = @transform_0, window_bounds = array<i64: 64, 32>}, {pipeline_mode = #tpu.pipeline_mode<synchronous>, transform_indices = @transform_1, window_bounds = array<i64: 8, 32>}, {transform_indices = @transform_2, window_bounds = array<i64: 1, 8, 32>}]} {
    %c8_i32 = arith.constant 8 : i32
    %0 = arith.muli %arg0, %c8_i32 : i32
    %c8_i32_0 = arith.constant 8 : i32
    %1 = arith.muli %arg1, %c8_i32_0 : i32
    %2 = arith.addi %0, %1 : i32
    %c8_i32_1 = arith.constant 8 : i32
    %3 = arith.muli %arg1, %c8_i32_1 : i32
    %4 = tpu.assume_multiple %3, 8 : i32
    %c0_i32 = arith.constant 0 : i32
    %5 = arith.addi %2, %c0_i32 : i32
    %6 = arith.index_cast %5 : i32 to index
    %7 = memref.load %arg2[%6] : memref<16xi32, #tpu.memory_space<smem>>
    %8 = arith.index_cast %7 : i32 to index
    %c0 = arith.constant 0 : index
    %9 = vector.load %arg3[%8, %c0] : memref<64x32xf32, #tpu.memory_space<vmem>>, vector<1x32xf32>
    %c0_2 = arith.constant 0 : index
    %10 = arith.index_cast %c0_i32 : i32 to index
    %c0_3 = arith.constant 0 : index
    %11 = vector.load %arg5[%c0_2, %10, %c0_3] : memref<1x8x32xf32, #tpu.memory_space<vmem>>, vector<1x1x32xf32>
    %12 = vector.shape_cast %11 : vector<1x1x32xf32> to vector<1x32xf32>
    %13 = vector.shape_cast %9 : vector<1x32xf32> to vector<1x1x32xf32>
    tpu.vector_store %arg5[%c0_2, %10, %c0_3], %13 {strides = array<i32>} : memref<1x8x32xf32, #tpu.memory_space<vmem>>, vector<1x1x32xf32>,
    %c1_i32 = arith.constant 1 : i32
    %14 = arith.addi %2, %c1_i32 : i32
    %15 = arith.index_cast %14 : i32 to index
    %16 = memref.load %arg2[%15] : memref<16xi32, #tpu.memory_space<smem>>
    %17 = arith.index_cast %16 : i32 to index
    %c0_4 = arith.constant 0 : index
    %18 = vector.load %arg3[%17, %c0_4] : memref<64x32xf32, #tpu.memory_space<vmem>>, vector<1x32xf32>
    %c0_5 = arith.constant 0 : index
    %19 = arith.index_cast %c1_i32 : i32 to index
    %c0_6 = arith.constant 0 : index
    %20 = vector.load %arg5[%c0_5, %19, %c0_6] : memref<1x8x32xf32, #tpu.memory_space<vmem>>, vector<1x1x32xf32>
    %21 = vector.shape_cast %20 : vector<1x1x32xf32> to vector<1x32xf32>
    %22 = vector.shape_cast %18 : vector<1x32xf32> to vector<1x1x32xf32>
    tpu.vector_store %arg5[%c0_5, %19, %c0_6], %22 {strides = array<i32>} : memref<1x8x32xf32, #tpu.memory_space<vmem>>, vector<1x1x32xf32>,
    %c2_i32 = arith.constant 2 : i32
    %23 = arith.addi %2, %c2_i32 : i32
    %24 = arith.index_cast %23 : i32 to index
    %25 = memref.load %arg2[%24] : memref<16xi32, #tpu.memory_space<smem>>
    %26 = arith.index_cast %25 : i32 to index
    %c0_7 = arith.constant 0 : index
    %27 = vector.load %arg3[%26, %c0_7] : memref<64x32xf32, #tpu.memory_space<vmem>>, vector<1x32xf32>
    %c0_8 = arith.constant 0 : index
    %28 = arith.index_cast %c2_i32 : i32 to index
    %c0_9 = arith.constant 0 : index
    %29 = vector.load %arg5[%c0_8, %28, %c0_9] : memref<1x8x32xf32, #tpu.memory_space<vmem>>, vector<1x1x32xf32>
    %30 = vector.shape_cast %29 : vector<1x1x32xf32> to vector<1x32xf32>
    %31 = vector.shape_cast %27 : vector<1x32xf32> to vector<1x1x32xf32>
    tpu.vector_store %arg5[%c0_8, %28, %c0_9], %31 {strides = array<i32>} : memref<1x8x32xf32, #tpu.memory_space<vmem>>, vector<1x1x32xf32>,
    %c3_i32 = arith.constant 3 : i32
    %32 = arith.addi %2, %c3_i32 : i32
    %33 = arith.index_cast %32 : i32 to index
    %34 = memref.load %arg2[%33] : memref<16xi32, #tpu.memory_space<smem>>
    %35 = arith.index_cast %34 : i32 to index
    %c0_10 = arith.constant 0 : index
    %36 = vector.load %arg3[%35, %c0_10] : memref<64x32xf32, #tpu.memory_space<vmem>>, vector<1x32xf32>
    %c0_11 = arith.constant 0 : index
    %37 = arith.index_cast %c3_i32 : i32 to index
    %c0_12 = arith.constant 0 : index
    %38 = vector.load %arg5[%c0_11, %37, %c0_12] : memref<1x8x32xf32, #tpu.memory_space<vmem>>, vector<1x1x32xf32>
    %39 = vector.shape_cast %38 : vector<1x1x32xf32> to vector<1x32xf32>
    %40 = vector.shape_cast %36 : vector<1x32xf32> to vector<1x1x32xf32>
    tpu.vector_store %arg5[%c0_11, %37, %c0_12], %40 {strides = array<i32>} : memref<1x8x32xf32, #tpu.memory_space<vmem>>, vector<1x1x32xf32>,
    %c4_i32 = arith.constant 4 : i32
    %41 = arith.addi %2, %c4_i32 : i32
    %42 = arith.index_cast %41 : i32 to index
    %43 = memref.load %arg2[%42] : memref<16xi32, #tpu.memory_space<smem>>
    %44 = arith.index_cast %43 : i32 to index
    %c0_13 = arith.constant 0 : index
    %45 = vector.load %arg3[%44, %c0_13] : memref<64x32xf32, #tpu.memory_space<vmem>>, vector<1x32xf32>
    %c0_14 = arith.constant 0 : index
    %46 = arith.index_cast %c4_i32 : i32 to index
    %c0_15 = arith.constant 0 : index
    %47 = vector.load %arg5[%c0_14, %46, %c0_15] : memref<1x8x32xf32, #tpu.memory_space<vmem>>, vector<1x1x32xf32>
    %48 = vector.shape_cast %47 : vector<1x1x32xf32> to vector<1x32xf32>
    %49 = vector.shape_cast %45 : vector<1x32xf32> to vector<1x1x32xf32>
    tpu.vector_store %arg5[%c0_14, %46, %c0_15], %49 {strides = array<i32>} : memref<1x8x32xf32, #tpu.memory_space<vmem>>, vector<1x1x32xf32>,
    %c5_i32 = arith.constant 5 : i32
    %50 = arith.addi %2, %c5_i32 : i32
    %51 = arith.index_cast %50 : i32 to index
    %52 = memref.load %arg2[%51] : memref<16xi32, #tpu.memory_space<smem>>
    %53 = arith.index_cast %52 : i32 to index
    %c0_16 = arith.constant 0 : index
    %54 = vector.load %arg3[%53, %c0_16] : memref<64x32xf32, #tpu.memory_space<vmem>>, vector<1x32xf32>
    %c0_17 = arith.constant 0 : index
    %55 = arith.index_cast %c5_i32 : i32 to index
    %c0_18 = arith.constant 0 : index
    %56 = vector.load %arg5[%c0_17, %55, %c0_18] : memref<1x8x32xf32, #tpu.memory_space<vmem>>, vector<1x1x32xf32>
    %57 = vector.shape_cast %56 : vector<1x1x32xf32> to vector<1x32xf32>
    %58 = vector.shape_cast %54 : vector<1x32xf32> to vector<1x1x32xf32>
    tpu.vector_store %arg5[%c0_17, %55, %c0_18], %58 {strides = array<i32>} : memref<1x8x32xf32, #tpu.memory_space<vmem>>, vector<1x1x32xf32>,
    %c6_i32 = arith.constant 6 : i32
    %59 = arith.addi %2, %c6_i32 : i32
    %60 = arith.index_cast %59 : i32 to index
    %61 = memref.load %arg2[%60] : memref<16xi32, #tpu.memory_space<smem>>
    %62 = arith.index_cast %61 : i32 to index
    %c0_19 = arith.constant 0 : index
    %63 = vector.load %arg3[%62, %c0_19] : memref<64x32xf32, #tpu.memory_space<vmem>>, vector<1x32xf32>
    %c0_20 = arith.constant 0 : index
    %64 = arith.index_cast %c6_i32 : i32 to index
    %c0_21 = arith.constant 0 : index
    %65 = vector.load %arg5[%c0_20, %64, %c0_21] : memref<1x8x32xf32, #tpu.memory_space<vmem>>, vector<1x1x32xf32>
    %66 = vector.shape_cast %65 : vector<1x1x32xf32> to vector<1x32xf32>
    %67 = vector.shape_cast %63 : vector<1x32xf32> to vector<1x1x32xf32>
    tpu.vector_store %arg5[%c0_20, %64, %c0_21], %67 {strides = array<i32>} : memref<1x8x32xf32, #tpu.memory_space<vmem>>, vector<1x1x32xf32>,
    %c7_i32 = arith.constant 7 : i32
    %68 = arith.addi %2, %c7_i32 : i32
    %69 = arith.index_cast %68 : i32 to index
    %70 = memref.load %arg2[%69] : memref<16xi32, #tpu.memory_space<smem>>
    %71 = arith.index_cast %70 : i32 to index
    %c0_22 = arith.constant 0 : index
    %72 = vector.load %arg3[%71, %c0_22] : memref<64x32xf32, #tpu.memory_space<vmem>>, vector<1x32xf32>
    %c0_23 = arith.constant 0 : index
    %73 = arith.index_cast %c7_i32 : i32 to index
    %c0_24 = arith.constant 0 : index
    %74 = vector.load %arg5[%c0_23, %73, %c0_24] : memref<1x8x32xf32, #tpu.memory_space<vmem>>, vector<1x1x32xf32>
    %75 = vector.shape_cast %74 : vector<1x1x32xf32> to vector<1x32xf32>
    %76 = vector.shape_cast %72 : vector<1x32xf32> to vector<1x1x32xf32>
    tpu.vector_store %arg5[%c0_23, %73, %c0_24], %76 {strides = array<i32>} : memref<1x8x32xf32, #tpu.memory_space<vmem>>, vector<1x1x32xf32>,
    %c8_i32_25 = arith.constant 8 : i32
    %c0_26 = arith.constant 0 : index
    %c0_27 = arith.constant 0 : index
    %c0_28 = arith.constant 0 : index
    %77 = vector.load %arg5[%c0_26, %c0_27, %c0_28] : memref<1x8x32xf32, #tpu.memory_space<vmem>>, vector<1x8x32xf32>
    %78 = vector.shape_cast %77 : vector<1x8x32xf32> to vector<8x32xf32>
    %cst = arith.constant 5.65685415 : f32
    %79 = vector.broadcast %cst : f32 to vector<8x32xf32>
    %80 = arith.mulf %78, %79 : vector<8x32xf32>
    %81 = arith.index_cast %4 : i32 to index
    %c0_29 = arith.constant 0 : index
    %82 = vector.load %arg4[%81, %c0_29] : memref<8x32xf32, #tpu.memory_space<vmem>>, vector<8x32xf32>
    %83 = arith.addf %80, %82 : vector<8x32xf32>
    %c0_30 = arith.constant 0 : index
    %c0_31 = arith.constant 0 : index
    %c0_32 = arith.constant 0 : index
    %84 = vector.load %arg5[%c0_30, %c0_31, %c0_32] : memref<1x8x32xf32, #tpu.memory_space<vmem>>, vector<1x8x32xf32>
    %85 = vector.shape_cast %84 : vector<1x8x32xf32> to vector<8x32xf32>
    %86 = vector.shape_cast %83 : vector<8x32xf32> to vector<1x8x32xf32>
    tpu.vector_store %arg5[%c0_30, %c0_31, %c0_32], %86 {strides = array<i32>} : memref<1x8x32xf32, #tpu.memory_space<vmem>>, vector<1x8x32xf32>,
    return
  }
  func.func @transform_0(%arg0: i32, %arg1: i32, %arg2: memref<16xi32, #tpu.memory_space<smem>>) -> (i32, i32) {
    %c0_i32 = arith.constant 0 : i32
    %c0_i32_0 = arith.constant 0 : i32
    %c0_i32_1 = arith.constant 0 : i32
    return %c0_i32, %c0_i32_0 : i32, i32
  }
  func.func @transform_1(%arg0: i32, %arg1: i32, %arg2: memref<16xi32, #tpu.memory_space<smem>>) -> (i32, i32) {
    %c0_i32 = arith.constant 0 : i32
    %c0_i32_0 = arith.constant 0 : i32
    %c0_i32_1 = arith.constant 0 : i32
    return %c0_i32, %c0_i32_0 : i32, i32
  }
  func.func @transform_2(%arg0: i32, %arg1: i32, %arg2: memref<16xi32, #tpu.memory_space<smem>>) -> (i32, i32, i32) {
    %c0_i32 = arith.constant 0 : i32
    %c0_i32_0 = arith.constant 0 : i32
    return %arg0, %arg1, %c0_i32 : i32, i32, i32
  }
}

</mosaic_0001>

<bundles_post_ra>
// kernel: tpu_custom_call.1
= control target key start
LH: loop header
LB: loop body
LE: loop exit
PB: predicated region body
PF: predicated region fallthrough
CT: control target
= control target key end

     0   :  { %s619_s0 = inlined_call_operand.vmem [shape: s32[16], index: 0, kind: input, shape index: {}]   ;;  %s620_s1 = inlined_call_operand.vmem [shape: f32[64,32], index: 1, kind: input, shape index: {}]   ;;  %s621_s2 = inlined_call_operand.vmem [shape: f32[8,32], index: 2, kind: input, shape index: {}]   ;;  %s622_s3 = inlined_call_operand.hbm [shape: f32[2,8,32], index: 3, kind: output, shape index: {}]  }
   0x1   :  { %s8_s14 = sshll.u32 %s619_s0, 4  ;;  %s9_s14 = int_to_ptr.vmem [resolvable:$true] %s8_s14 }
   0x2   :  { %s340_s15 = scalar_lea.vmem %s9_s14, 16  ;;  %p345_p1 = scmp.lt.s32.totalorder %s9_s14, %s9_s14 }
   0x3   :  { %p341_p0 = scmp.ne.s32.totalorder %s9_s14, %s340_s15  ;;  %p346_p2 = scmp.lt.s32.totalorder %s340_s15, %s340_s15 }
   0x5   :  { %p347_p3 = por %p346_p2, %p345_p1 }
   0x7   :  { %p348_p4 = pnand %p347_p3, %p341_p0 }
   0x9   :  { %351 = shalt.err (!%p348_p4)  }
   0xa   :  { %s434_s16 = smov [#allocation3]  }
   0xb   :  { %11 = dma.vmem_to_smem %s9_s14, 16, %s434_s16, [#allocation2] }
   0xc   :  { %404 = dma.done.wait [#allocation2], 16 }
   0xd   :  { %405 = vsyncadd [#allocation2], 4294967280 }
   0xe   :  { %13 = sfence }
   0xf   :  { %14 = vsyncpa [#allocation5], 0 }
  0x10   :  { %16 = vsyncpa [#allocation5 + $0x1], 0  ;;  %s459_s17 = smov 0   ;;  %s461_s18 = smov 0  }
  0x11   :  { %s463_s0 = smov 0   ;;  %s465_s19 = smov 0  }
  0x12   :  { %s467_s20 = smov 0   ;;  %s469_s21 = smov 0  }
  0x13 LB: > { %s274_s22 = sadd.s32 4294967295, %s432_s21   ;;  %s275_s23 = sadd.s32 4294967294, %s432_s21   ;;  %s432_s21 = sphi %s469_s21, %s22_s21   ;;  %s428_s20 = sphi %s467_s20, %s634_s20   ;;  %s424_s19 = sphi %s465_s19, %s633_s19   ;;  %s420_s0 = sphi %s463_s0, %s632_s0   ;;  %s416_s18 = sphi %s461_s18, %s631_s18   ;;  %s412_s17 = sphi %s459_s17, %s630_s17  }
  0x14   : > { %s34_s24 = sadd.s32 1, %s428_s20  ;;  %s85_s25 = sadd.s32 1, %s420_s0 }
  0x15   : > { %p36_p5 = scmp.ge.s32.totalorder %s34_s24, 2  ;;  %p95_p6 = scmp.ne.s32.totalorder %s420_s0, %s416_s18 }
  0x16   : > { %p96_p7 = scmp.eq.s32.totalorder %s274_s22, 1  ;;  %p101_p8 = scmp.ne.s32.totalorder %s416_s18, %s412_s17 }
  0x17   : > { %s636_s24 = smov (%p36_p5, %s34_s24), 0  ;;  %p102_p10 = scmp.eq.s32.totalorder %s275_s23, 1 }
  0x18   : > { %625 = sst [smem:[#allocation8_spill]] %s636_s24  ;;  %p499_p9 = por %p96_p7, %p95_p6 }
  0x19   : > { %s80_s27 = ssub.s32 %s428_s20, %s636_s24  ;;  %p277_p11 = scmp.ge.s32.totalorder %s432_s21, 1 }
  0x1a   : > { %p83_p12 = scmp.eq.s32.totalorder %s80_s27, 0  ;;  %p506_p13 = por %p102_p10, %p101_p8 }
  0x1b   : > { %p126_p0 = scmp.lt.s32.totalorder %s432_s21, 3 }
  0x1c   : > { %s512_s29 = scalar_select %p83_p12, %s420_s0, %s85_s25  }
  0x1d   : > { %p127_p1 = pnand %p277_p11, %p126_p0 }
  0x1e   : > { %s624_s30 = sand.u32 (!%p127_p1), 1, %s416_s18   ;;  %s279_s4 = sshll.u32 (!%p127_p1), %s424_s19, 3  ;;  %vm149_vm0 = vcmask (!%p127_p1), 253952   ;;  %v189_v9 = vld [vmem:[%s621_s2] sm:$0xff] (!%p127_p1)  ;;  %vm191_vm1 = vcmask (!%p127_p1), 261120  }
  0x1f   : > { %130 = sbr.rel (%p127_p1) target bundleno = 75 (0x4b), region = 28  ;;  %s278_s5 = sshll.u32 (!%p127_p1), %s624_s30, 3 }
  0x20   : > { %s146_s6 = sld [smem:[#allocation3 + %s279_s4]] (!%p127_p1)  ;;  %s151_s7 = sadd.s32 (!%p127_p1), 1, %s279_s4 }
  0x21   : > { %s152_s8 = sld [smem:[#allocation3 + %s151_s7]] (!%p127_p1)  ;;  %s156_s9 = sadd.s32 (!%p127_p1), 2, %s279_s4 }
  0x22   : > { %s157_s10 = sld [smem:[#allocation3 + %s156_s9]] (!%p127_p1)  ;;  %s161_s11 = sadd.s32 (!%p127_p1), 3, %s279_s4 }
  0x23   : > { %s162_s12 = sld [smem:[#allocation3 + %s161_s11]] (!%p127_p1)  ;;  %s166_s13 = sadd.s32 (!%p127_p1), 4, %s279_s4 }
  0x24   : > { %s167_s14 = sld [smem:[#allocation3 + %s166_s13]] (!%p127_p1)  ;;  %s171_s15 = sadd.s32 (!%p127_p1), 5, %s279_s4 }
  0x25   : > { %s172_s25 = sld [smem:[#allocation3 + %s171_s15]] (!%p127_p1)  ;;  %s176_s27 = sadd.s32 (!%p127_p1), 6, %s279_s4 }
  0x26   : > { %s147_s23 = scalar_lea.vmem %s620_s1, %s146_s6  ;;  %s181_s24 = sadd.s32 7, %s279_s4 }
  0x27   : > { %v148_v0 = vld [vmem:[%s147_s23] sm:$0x1]  ;;  %s521_s30 = scalar_lea.vmem [#allocation4], %s278_s5  ;;  %s153_s11 = scalar_lea.vmem %s620_s1, %s152_s8 }
  0x28   : > { %150 = vst.msk [vmem:[%s521_s30] sm:$0x1] %vm149_vm0, %v148_v0  ;;  %s177_s13 = sld [smem:[#allocation3 + %s176_s27]]  ;;  %v154_v1 = vld [vmem:[%s153_s11] sm:$0x1]  ;;  %s158_s4 = scalar_lea.vmem %s620_s1, %s157_s10 }
  0x29   : > { %s182_s5 = sld [smem:[#allocation3 + %s181_s24]]  ;;  %155 = vst.msk [vmem:[%s521_s30 + $0x1] sm:$0x1] %vm149_vm0, %v154_v1  ;;  %v159_v2 = vld [vmem:[%s158_s4] sm:$0x1]  ;;  %s163_s23 = scalar_lea.vmem %s620_s1, %s162_s12 }
  0x2a   : > { %160 = vst.msk [vmem:[%s521_s30 + $0x2] sm:$0x1] %vm149_vm0, %v159_v2  ;;  %v164_v3 = vld [vmem:[%s163_s23] sm:$0x1]  ;;  %s168_s7 = scalar_lea.vmem %s620_s1, %s167_s14  ;;  %s281_s22 = sshll.u32 %s424_s19, 7 }
  0x2b   : > { %165 = vst.msk [vmem:[%s521_s30 + $0x3] sm:$0x1] %vm149_vm0, %v164_v3  ;;  %v169_v4 = vld [vmem:[%s168_s7] sm:$0x1]  ;;  %s173_s9 = scalar_lea.vmem %s620_s1, %s172_s25  ;;  %s208_s23 = sshll.u32 %s521_s30, 4  ;;  %s571_s23 = int_to_ptr.vmem [resolvable:$true] %s208_s23 }
  0x2c   : > { %170 = vst.msk [vmem:[%s521_s30 + $0x4] sm:$0x1] %vm149_vm0, %v169_v4  ;;  %v174_v5 = vld [vmem:[%s173_s9] sm:$0x1]  ;;  %s628_s27 = sand.u32 1, %s416_s18   ;;  %s352_s24 = scalar_lea.vmem %s571_s23, 128 }
  0x2d   : > { %175 = vst.msk [vmem:[%s521_s30 + $0x5] sm:$0x1] %vm149_vm0, %v174_v5  ;;  %s194_s7 = scalar_lea.sflag [#allocation5], %s628_s27  ;;  %p353_p2 = scmp.ne.s32.totalorder %s571_s23, %s352_s24 }
  0x2e   : > { %s178_s6 = scalar_lea.vmem %s620_s1, %s177_s13  ;;  %s435_s19 = smov [#allocation4]  }
  0x2f   : > { %v179_v6 = vld [vmem:[%s178_s6] sm:$0x1]  ;;  %s183_s4 = scalar_lea.vmem %s620_s1, %s182_s5  ;;  %s569_s5 = scalar_lea.hbm %s622_s3, %s281_s22 }
  0x30   : > { %180 = vst.msk [vmem:[%s521_s30 + $0x6] sm:$0x1] %vm149_vm0, %v179_v6  ;;  %v184_v7 = vld [vmem:[%s183_s4] sm:$0x1]  ;;  %p354_p3 = pnand %p353_p2, %p499_p9  ;;  %s356_s10 = sshll.u32 %s435_s19, 4  ;;  %s357_s10 = int_to_ptr.vmem [resolvable:$false] %s356_s10 }
  0x31   : > { %185 = vst.msk [vmem:[%s521_s30 + $0x7] sm:$0x1] %vm149_vm0, %v184_v7  ;;  %s358_s9 = scalar_lea.vmem %s357_s10, 256  ;;  %p359_p5 = scmp.lt.s32.totalorder %s571_s23, %s357_s10 }
  0x32   : > { %p355_p4 = pneg %p354_p3  ;;  %p360_p6 = scmp.lt.s32.totalorder %s358_s9, %s352_s24 }
  0x34   : > { %p361_p7 = por %p360_p6, %p359_p5 }
  0x36   : > { %p362_p8 = pnand %p361_p7, %p355_p4 }
  0x38   : > { %v186_v8 = vld [vmem:[%s521_s30] sm:$0xff] }
  0x39   : > { %v187_v10 = vmul.f32 5.656854, %v186_v8 }
  0x3b   : > { %v190_v11 = vadd.f32 %v189_v9, %v187_v10 }
  0x3d   : > { %192 = vst.msk [vmem:[%s521_s30] sm:$0xff] %vm191_vm1, %v190_v11 }
  0x3e   : > { %365 = shalt.err (!%p362_p8)
}
  0x3f   : > { %s366_s30 = scalar_lea.hbm %s569_s5, 128  ;;  %s370_s6 = scalar_lea.hbm %s622_s3, 256 }
  0x40   : > { %p367_p10 = scmp.ne.s32.totalorder %s569_s5, %s366_s30  ;;  %p371_p0 = scmp.lt.u32.totalorder %s569_s5, %s622_s3 }
  0x41   : > { %p372_p1 = scmp.lt.u32.totalorder %s370_s6, %s366_s30  ;;  %p374_p3 = scmp.lt.u32.totalorder %s366_s30, %s569_s5 }
  0x42   : > { %p368_p11 = pnand %p367_p10, %p499_p9 }
  0x43   : > { %p373_p2 = por %p372_p1, %p371_p0 }
  0x44   : > { %p369_p12 = pneg %p368_p11 }
  0x45   : > { %p375_p4 = por %p374_p3, %p373_p2 }
  0x47   : > { %p376_p5 = pnand %p375_p4, %p369_p12 }
  0x49   : > { %379 = shalt.err (!%p376_p5)
}
  0x4a   : > { %284 = dma.vmem_to_hbm [thread:$0]  (%p499_p9), %s571_s23, 128, %s569_s5, %s194_s7  }
  0x4b PF: > { %p290_p6 = scmp.ge.s32.totalorder %s432_s21, 2  ;;  %s220_s4 = sand.u32 1, %s412_s17  }
  0x4c   : > { %s221_s25 = scalar_lea.sflag [#allocation5], %s220_s4 }
  0x4d   : > { %p287_p7 = pnand %p290_p6, %p506_p13 }
  0x4f   : > { %407 = dma.done.wait (!%p287_p7), %s221_s25, 128  }
  0x50   : > { %409 = vsyncadd (!%p287_p7), %s221_s25, 4294967168  ;;  %s22_s21 = sadd.s32 1, %s432_s21   ;;  %s629_s26 = sld [smem:[#allocation8_spill]] }
  0x51   : > { %p19_p8 = scmp.ge.s32.totalorder %s22_s21, 4   ;;  %s630_s17 = smov %s416_s18 }
  0x52   : > { %s631_s18 = smov %s420_s0  ;;  %s632_s0 = smov %s512_s29 }
  0x53   : > { %s633_s19 = smov %s428_s20  ;;  %21 = sbr.rel (!%p19_p8) target bundleno = 19 (0x13), region = 69 }
  0x56   : > { %s634_s20 = smov %s629_s26 }
  0x5a   :  { %226 = vsyncpa [#allocation5], 1 }
  0x5b   :  { %228 = vsyncpa [#allocation5 + $0x1], 1 }

</bundles_post_ra>
